<compile_context>
chip_gen: v6e
topology: v6e:2x2x1
jax: 0.10.0
libtpu: 0.0.40
codegen_flags: <defaults>
</compile_context>

<pallas_src>
import functools

import jax
import jax.numpy as jnp
from jax.experimental import pallas as pl
from jax.experimental.pallas import tpu as pltpu


def _round_up(a, b):
    return (a + b - 1) // b * b


def _choose_tiles(n, tile_m):
    """Row-tile size and padded node count.

    * padded N is a multiple of 128 (lane-aligned adjacency columns, safe for
      int8 / bf16 packed layouts).
    * >= 4 row tiles when possible so dual-TensorCore parts get >= 2 grid steps
      per core and the adjacency DMA overlaps compute.
    """
    np_ = _round_up(max(n, 1), 128)
    tile_m = max(32, 1 << (max(int(tile_m), 32).bit_length() - 1))  # pow2 >= 32
    tm = min(tile_m, np_)
    while np_ % tm:
        tm //= 2
    while np_ // tm < 4 and tm > 32:
        tm //= 2
    return tm, np_


def _const_spec(shape):
    """Constant-index block: resident across the grid, single-buffered."""
    imap = lambda i: (0,) * len(shape)
    try:
        return pl.BlockSpec(shape, imap, pipeline_mode=pl.Buffered(1))
    except Exception:  # older jax without pipeline_mode support
        return pl.BlockSpec(shape, imap)


def _vmem_limit_bytes(tm, np_, feat):
    # adj stripe (int8, double buffered) + in-register bf16 widen + resident
    # bf16 activations + slack for weights / outputs / compiler temps.
    need = 2 * tm * np_ + 2 * tm * np_ * 2 + 2 * np_ * max(feat, 64) * 2 + (4 << 20)
    return int(min(max(need, 16 << 20), 48 << 20))  # <= 48 MiB fits v7x's 64 MiB


# --------------------------------------------------------------------------
# Kernel 1: GraphConv(16 -> 32) + ReLU, row-tiled over destination nodes.
# --------------------------------------------------------------------------
def _graphconv1_kernel(x_full_ref, adj_ref, w_root_ref, w_nbr_ref, b_ref,
                       h1_ref, *, n_valid):
    tm = adj_ref.shape[0]
    row0 = pl.multiple_of(pl.program_id(0) * tm, tm)

    # Neighbor aggregation: int8 adjacency widened to bf16 (exact 0/1) ->
    # single-pass bf16 MXU matmul, f32 accumulate.
    adj = adj_ref[...].astype(jnp.bfloat16)                                   # [tm, Np]
    agg = jnp.dot(adj, x_full_ref[...], preferred_element_type=jnp.float32)   # [tm, F]

    # Root + neighbor projections as two small matmuls (no scratch packing);
    # the row tile is sliced from the resident buffer (no duplicate input DMA).
    x_tile = x_full_ref[pl.ds(row0, tm), :]                                   # [tm, F]
    h = (jnp.dot(x_tile, w_root_ref[...], preferred_element_type=jnp.float32)
         + jnp.dot(agg.astype(jnp.bfloat16), w_nbr_ref[...],
                   preferred_element_type=jnp.float32)
         + b_ref[...])
    h = jnp.maximum(h, 0.0)                                                   # ReLU

    # Zero padded rows so the HBM intermediate carries no junk (otherwise they
    # would hold relu(b1); harmless but fragile).
    row_ids = row0 + jax.lax.broadcasted_iota(jnp.int32, (tm, 1), 0)
    h1_ref[...] = jnp.where(row_ids < n_valid, h, 0.0).astype(h1_ref.dtype)


# --------------------------------------------------------------------------
# Kernel 2: GraphConv(32 -> 64) + ReLU + fc1(64->32) + ReLU + fc2(32->1).
# --------------------------------------------------------------------------
def _graphconv2_head_kernel(h1_full_ref, adj_ref, w_root_ref, w_nbr_ref, b_ref,
                            wfc1_ref, bfc1_ref, wfc2_row_ref, bfc2_ref, out_ref):
    tm = adj_ref.shape[0]
    row0 = pl.multiple_of(pl.program_id(0) * tm, tm)

    adj = adj_ref[...].astype(jnp.bfloat16)                                   # [tm, Np]
    agg = jnp.dot(adj, h1_full_ref[...], preferred_element_type=jnp.float32)  # [tm, 32]

    h1_tile = h1_full_ref[pl.ds(row0, tm), :]                                 # [tm, 32]
    h2 = jnp.maximum(
        jnp.dot(h1_tile, w_root_ref[...], preferred_element_type=jnp.float32)
        + jnp.dot(agg.astype(jnp.bfloat16), w_nbr_ref[...],
                  preferred_element_type=jnp.float32)
        + b_ref[...], 0.0)                                                    # [tm, 64]

    h3 = jnp.maximum(
        jnp.dot(h2.astype(jnp.bfloat16), wfc1_ref[...],
                preferred_element_type=jnp.float32)
        + bfc1_ref[...], 0.0)                                                 # [tm, 32]

    # fc2 has output width 1: elementwise mul + lane reduce on VPU/XLU instead
    # of a 1/128-filled MXU push.  [N,1] writeback is tiny vs the adj stream.
    out = jnp.sum(h3 * wfc2_row_ref[...], axis=-1, keepdims=True) + bfc2_ref[...]
    out_ref[...] = out.astype(out_ref.dtype)


# --------------------------------------------------------------------------
# Wrapper
# --------------------------------------------------------------------------
def prepare_params(params):
    """Cast MXU-operand weights to bf16 once; biases / VPU weights stay f32."""
    bf = lambda a: a.astype(jnp.bfloat16)
    return {
        "w1_root": bf(params["w1_root"]), "w1_nbr": bf(params["w1_nbr"]),
        "b1": params["b1"].astype(jnp.float32),
        "w2_root": bf(params["w2_root"]), "w2_nbr": bf(params["w2_nbr"]),
        "b2": params["b2"].astype(jnp.float32),
        "wfc1": bf(params["wfc1"]), "bfc1": params["bfc1"].astype(jnp.float32),
        "wfc2_row": params["wfc2"].T.astype(jnp.float32),   # [1, 32], VPU operand
        "bfc2": params["bfc2"].astype(jnp.float32),
    }


def traffic_gnn_forward(x, adj, kp, *, tile_m=128):
    """x: [N, 16] f32, adj: [N, N] with A[dst, src] = edge count. Returns [N, 1] f32.

    tile_m: row-tile size (power of two).  128 is a safe default; on v5e/v6e
    (128 MiB VMEM) 256-512 amortizes the per-step overhead at large N, on v7x
    keep the stripe within the explicit <= 48 MiB budget set below.
    """
    n, fdim = x.shape
    tm, np_ = _choose_tiles(n, tile_m)
    pad = np_ - n
    if pad:  # padded adj rows/cols are zero -> they never leak into real rows.
        x = jnp.pad(x, ((0, pad), (0, 0)))
        adj = jnp.pad(adj, ((0, pad), (0, pad)))

    # int8 adjacency: exact for small edge multiplicities, 1 byte/element HBM
    # stream (the kernel is HBM-bound on this stream on v5e/v6e/v7x).
    adj_i8 = adj.astype(jnp.int8)
    x_bf16 = x.astype(jnp.bfloat16)
    n_tiles = np_ // tm

    cparams = pltpu.CompilerParams(
        dimension_semantics=("parallel",),
        vmem_limit_bytes=_vmem_limit_bytes(tm, np_, fdim),
    )

    # ---- Pass 1: GraphConv(16 -> 32) + ReLU -> bf16 h1 ----
    cost1 = pl.CostEstimate(
        flops=2 * np_ * np_ * fdim + 2 * 2 * np_ * fdim * 32,
        transcendentals=0,
        bytes_accessed=np_ * np_ + np_ * fdim * 2 + np_ * 32 * 2,
    )
    h1 = pl.pallas_call(
        functools.partial(_graphconv1_kernel, n_valid=n),
        out_shape=jax.ShapeDtypeStruct((np_, 32), jnp.bfloat16),
        grid=(n_tiles,),
        in_specs=[
            _const_spec((np_, fdim)),                     # x (resident, bf16)
            pl.BlockSpec((tm, np_), lambda i: (i, 0)),    # adj row stripe (int8)
            _const_spec((fdim, 32)),                      # w1_root (bf16)
            _const_spec((fdim, 32)),                      # w1_nbr (bf16)
            _const_spec((1, 32)),                         # b1 (f32)
        ],
        out_specs=pl.BlockSpec((tm, 32), lambda i: (i, 0)),
        compiler_params=cparams,
        cost_estimate=cost1,
    )(x_bf16, adj_i8, kp["w1_root"], kp["w1_nbr"], kp["b1"])

    # ---- Pass 2: GraphConv(32 -> 64) + ReLU + fc1 + ReLU + fc2 ----
    cost2 = pl.CostEstimate(
        flops=(2 * np_ * np_ * 32 + 2 * 2 * np_ * 32 * 64
               + 2 * np_ * 64 * 32 + 2 * np_ * 32),
        transcendentals=0,
        bytes_accessed=np_ * np_ + np_ * 32 * 2 + np_ * 4,
    )
    out = pl.pallas_call(
        _graphconv2_head_kernel,
        out_shape=jax.ShapeDtypeStruct((np_, 1), jnp.float32),
        grid=(n_tiles,),
        in_specs=[
            _const_spec((np_, 32)),                       # h1 (resident, bf16)
            pl.BlockSpec((tm, np_), lambda i: (i, 0)),    # adj row stripe (int8)
            _const_spec((32, 64)),                        # w2_root (bf16)
            _const_spec((32, 64)),                        # w2_nbr (bf16)
            _const_spec((1, 64)),                         # b2 (f32)
            _const_spec((64, 32)),                        # wfc1 (bf16)
            _const_spec((1, 32)),                         # bfc1 (f32)
            _const_spec((1, 32)),                         # wfc2 (row, f32)
            _const_spec((1, 1)),                          # bfc2 (f32)
        ],
        out_specs=pl.BlockSpec((tm, 1), lambda i: (i, 0)),
        compiler_params=cparams,
        cost_estimate=cost2,
    )(h1, adj_i8, kp["w2_root"], kp["w2_nbr"], kp["b2"],
      kp["wfc1"], kp["bfc1"], kp["wfc2_row"], kp["bfc2"])

    return out[:n]


# --------------------------------------------------------------------------
# Parameters / graph helpers
# --------------------------------------------------------------------------
def init_params(key):
    """Deterministic parameter init matching TrafficGNN shapes (stored [in, out])."""
    ks = jax.random.split(key, 10)

    def lin(k, fan_in, fan_out):
        bound = 1.0 / jnp.sqrt(fan_in)
        return jax.random.uniform(k, (fan_in, fan_out), jnp.float32, -bound, bound)

    return {
        # GraphConv(16, 32): root/self weight, neighbor weight, bias
        "w1_root": lin(ks[0], 16, 32),
        "w1_nbr":  lin(ks[1], 16, 32),
        "b1":      jax.random.uniform(ks[2], (1, 32), jnp.float32, -0.25, 0.25),
        # GraphConv(32, 64)
        "w2_root": lin(ks[3], 32, 64),
        "w2_nbr":  lin(ks[4], 32, 64),
        "b2":      jax.random.uniform(ks[5], (1, 64), jnp.float32, -0.176, 0.176),
        # Linear(64, 32)
        "wfc1": lin(ks[6], 64, 32),
        "bfc1": jax.random.uniform(ks[7], (1, 32), jnp.float32, -0.125, 0.125),
        # Linear(32, 1)
        "wfc2": lin(ks[8], 32, 1),
        "bfc2": jax.random.uniform(ks[9], (1, 1), jnp.float32, -0.176, 0.176),
    }


def edges_to_dense_adj(edge_index, num_nodes):
    """edge_index: [2, E] int32 (row 0 = src, row 1 = dst) -> dense A[dst, src]."""
    src, dst = edge_index[0], edge_index[1]
    adj = jnp.zeros((num_nodes, num_nodes), jnp.float32)
    return adj.at[dst, src].add(1.0)


if __name__ == "__main__":
    key = jax.random.PRNGKey(0)
    k_x, k_p = jax.random.split(key)

    N = 256  # nodes; node feature dim = 16 (matches GraphConv(16, 32))
    x = jax.random.normal(k_x, (N, 16), jnp.float32)

    # Deterministic graph: bidirectional ring + bidirectional quarter-chords.
    idx = jnp.arange(N, dtype=jnp.int32)
    src = jnp.concatenate([idx, (idx + 1) % N, idx, (idx + N // 4) % N])
    dst = jnp.concatenate([(idx + 1) % N, idx, (idx + N // 4) % N, idx])
    edge_index = jnp.stack([src, dst])                     # [2, 4N]
    adj = edges_to_dense_adj(edge_index, N)

    params = init_params(k_p)
    kparams = prepare_params(params)

    out = traffic_gnn_forward(x, adj, kparams, tile_m=128)
    jax.block_until_ready(out)

    # Pure-JAX references of the same module semantics.
    def ref_forward(x, adj, p, cast_bf16):
        c = ((lambda a: a.astype(jnp.bfloat16).astype(jnp.float32))
             if cast_bf16 else (lambda a: a))
        xr = c(x)
        h = jnp.maximum(xr @ c(p["w1_root"]) + (adj @ xr) @ c(p["w1_nbr"]) + p["b1"], 0.0)
        h = jnp.maximum(h @ c(p["w2_root"]) + (adj @ h) @ c(p["w2_nbr"]) + p["b2"], 0.0)
        h = jnp.maximum(h @ c(p["wfc1"]) + p["bfc1"], 0.0)
        return h @ c(p["wfc2"]) + p["bfc2"]

    assert out.shape == (N, 1)
    # Tight wiring check against a reference using the same bf16 input rounding.
    exp_bf16 = ref_forward(x, adj, params, cast_bf16=True)
    assert jnp.allclose(out, exp_bf16, atol=3e-2, rtol=3e-2), \
        float(jnp.max(jnp.abs(out - exp_bf16)))
    # Coarse check against the exact f32 module semantics (bf16 MXU operands).
    exp_f32 = ref_forward(x, adj, params, cast_bf16=False)
    assert jnp.allclose(out, exp_f32, atol=1.5e-1, rtol=1.5e-1), \
        float(jnp.max(jnp.abs(out - exp_f32)))

    print("KERNEL_OK")
</pallas_src>

<mosaic_0001>
module attributes {stable_mosaic.version = 11 : i64} {
  func.func @_graphconv1_kernel(%arg0: i32, %arg1: memref<256x16xbf16, #tpu.memory_space<vmem>>, %arg2: memref<64x256xi8, #tpu.memory_space<vmem>>, %arg3: memref<16x32xbf16, #tpu.memory_space<vmem>>, %arg4: memref<16x32xbf16, #tpu.memory_space<vmem>>, %arg5: memref<1x32xf32, #tpu.memory_space<vmem>>, %arg6: memref<64x32xbf16, #tpu.memory_space<vmem>>) attributes {dimension_semantics = [#tpu.dimension_semantics<parallel>], iteration_bounds = array<i64: 4>, scalar_prefetch = 0 : i64, scratch_operands = 0 : i64, tpu.core_type = #tpu.core_type<tc>, window_params = [{pipeline_mode = #tpu.pipeline_mode<synchronous>, transform_indices = @transform_0, window_bounds = array<i64: 256, 16>}, {transform_indices = @transform_1, window_bounds = array<i64: 64, 256>}, {pipeline_mode = #tpu.pipeline_mode<synchronous>, transform_indices = @transform_2, window_bounds = array<i64: 16, 32>}, {pipeline_mode = #tpu.pipeline_mode<synchronous>, transform_indices = @transform_3, window_bounds = array<i64: 16, 32>}, {pipeline_mode = #tpu.pipeline_mode<synchronous>, transform_indices = @transform_4, window_bounds = array<i64: 1, 32>}, {transform_indices = @transform_5, window_bounds = array<i64: 64, 32>}]} {
    %c64_i32 = arith.constant 64 : i32
    %0 = arith.muli %arg0, %c64_i32 : i32
    %1 = tpu.assume_multiple %0, 64 : i32
    %c0 = arith.constant 0 : index
    %c0_0 = arith.constant 0 : index
    %2 = vector.load %arg2[%c0, %c0_0] : memref<64x256xi8, #tpu.memory_space<vmem>>, vector<64x256xi8>
    %3 = arith.sitofp %2 : vector<64x256xi8> to vector<64x256xbf16>
    %c0_1 = arith.constant 0 : index
    %c0_2 = arith.constant 0 : index
    %4 = vector.load %arg1[%c0_1, %c0_2] : memref<256x16xbf16, #tpu.memory_space<vmem>>, vector<256x16xbf16>
    %cst = arith.constant dense<0.000000e+00> : vector<64x16xf32>
    %5 = tpu.matmul %3, %4, %cst {dimension_numbers = #tpu.dot_dimension_numbers<[1], [0], [0], [1], [0, 0, 1, 1], [], []>} : vector<64x256xbf16>, vector<256x16xbf16>, vector<64x16xf32> -> vector<64x16xf32>
    %6 = arith.index_cast %1 : i32 to index
    %c0_3 = arith.constant 0 : index
    %7 = vector.load %arg1[%6, %c0_3] : memref<256x16xbf16, #tpu.memory_space<vmem>>, vector<64x16xbf16>
    %c0_4 = arith.constant 0 : index
    %c0_5 = arith.constant 0 : index
    %8 = vector.load %arg3[%c0_4, %c0_5] : memref<16x32xbf16, #tpu.memory_space<vmem>>, vector<16x32xbf16>
    %cst_6 = arith.constant dense<0.000000e+00> : vector<64x32xf32>
    %9 = tpu.matmul %7, %8, %cst_6 {dimension_numbers = #tpu.dot_dimension_numbers<[1], [0], [0], [1], [0, 0, 1, 1], [], []>} : vector<64x16xbf16>, vector<16x32xbf16>, vector<64x32xf32> -> vector<64x32xf32>
    %10 = arith.truncf %5 : vector<64x16xf32> to vector<64x16xbf16>
    %c0_7 = arith.constant 0 : index
    %c0_8 = arith.constant 0 : index
    %11 = vector.load %arg4[%c0_7, %c0_8] : memref<16x32xbf16, #tpu.memory_space<vmem>>, vector<16x32xbf16>
    %cst_9 = arith.constant dense<0.000000e+00> : vector<64x32xf32>
    %12 = tpu.matmul %10, %11, %cst_9 {dimension_numbers = #tpu.dot_dimension_numbers<[1], [0], [0], [1], [0, 0, 1, 1], [], []>} : vector<64x16xbf16>, vector<16x32xbf16>, vector<64x32xf32> -> vector<64x32xf32>
    %13 = arith.addf %9, %12 : vector<64x32xf32>
    %c0_10 = arith.constant 0 : index
    %c0_11 = arith.constant 0 : index
    %14 = vector.load %arg5[%c0_10, %c0_11] : memref<1x32xf32, #tpu.memory_space<vmem>>, vector<1x32xf32>
    %15 = vector.broadcast %14 : vector<1x32xf32> to vector<64x32xf32>
    %16 = arith.addf %13, %15 : vector<64x32xf32>
    %cst_12 = arith.constant 0.000000e+00 : f32
    %17 = vector.broadcast %cst_12 : f32 to vector<64x32xf32>
    %18 = arith.maximumf %16, %17 : vector<64x32xf32>
    %19 = tpu.iota {dimensions = array<i32: 0>} : vector<64x1xi32>
    %20 = vector.broadcast %1 : i32 to vector<64x1xi32>
    %21 = arith.addi %20, %19 : vector<64x1xi32>
    %c256_i32 = arith.constant 256 : i32
    %22 = vector.broadcast %c256_i32 : i32 to vector<64x1xi32>
    %23 = arith.cmpi slt, %21, %22 : vector<64x1xi32>
    %cst_13 = arith.constant 0.000000e+00 : f32
    %24 = vector.shape_cast %23 : vector<64x1xi1> to vector<64x1xi1>
    %25 = vector.broadcast %24 : vector<64x1xi1> to vector<64x32xi1>
    %26 = vector.broadcast %cst_13 : f32 to vector<64x32xf32>
    %27 = arith.select %25, %18, %26 : vector<64x32xi1>, vector<64x32xf32>
    %28 = arith.truncf %27 : vector<64x32xf32> to vector<64x32xbf16>
    %c0_14 = arith.constant 0 : index
    %c0_15 = arith.constant 0 : index
    %29 = vector.load %arg6[%c0_14, %c0_15] : memref<64x32xbf16, #tpu.memory_space<vmem>>, vector<64x32xbf16>
    tpu.vector_store %arg6[%c0_14, %c0_15], %28 {strides = array<i32>} : memref<64x32xbf16, #tpu.memory_space<vmem>>, vector<64x32xbf16>,
    return
  }
  func.func @transform_0(%arg0: i32) -> (i32, i32) {
    %c0_i32 = arith.constant 0 : i32
    %c0_i32_0 = arith.constant 0 : i32
    %c0_i32_1 = arith.constant 0 : i32
    return %c0_i32, %c0_i32_0 : i32, i32
  }
  func.func @transform_1(%arg0: i32) -> (i32, i32) {
    %c0_i32 = arith.constant 0 : i32
    %c0_i32_0 = arith.constant 0 : i32
    return %arg0, %c0_i32 : i32, i32
  }
  func.func @transform_2(%arg0: i32) -> (i32, i32) {
    %c0_i32 = arith.constant 0 : i32
    %c0_i32_0 = arith.constant 0 : i32
    %c0_i32_1 = arith.constant 0 : i32
    return %c0_i32, %c0_i32_0 : i32, i32
  }
  func.func @transform_3(%arg0: i32) -> (i32, i32) {
    %c0_i32 = arith.constant 0 : i32
    %c0_i32_0 = arith.constant 0 : i32
    %c0_i32_1 = arith.constant 0 : i32
    return %c0_i32, %c0_i32_0 : i32, i32
  }
  func.func @transform_4(%arg0: i32) -> (i32, i32) {
    %c0_i32 = arith.constant 0 : i32
    %c0_i32_0 = arith.constant 0 : i32
    %c0_i32_1 = arith.constant 0 : i32
    return %c0_i32, %c0_i32_0 : i32, i32
  }
  func.func @transform_5(%arg0: i32) -> (i32, i32) {
    %c0_i32 = arith.constant 0 : i32
    %c0_i32_0 = arith.constant 0 : i32
    return %arg0, %c0_i32 : i32, i32
  }
}

</mosaic_0001>

<bundles_post_ra>
// kernel: tpu_custom_call.1
= control target key start
LH: loop header
LB: loop body
LE: loop exit
PB: predicated region body
PF: predicated region fallthrough
CT: control target
= control target key end

     0   :  { %s1017_s18 = smov 0   ;;  %s1158_s0 = inlined_call_operand.vmem [shape: bf16[256,16], index: 0, kind: input, shape index: {}]   ;;  %s1159_s1 = inlined_call_operand.vmem [shape: s8[256,256], index: 1, kind: input, shape index: {}]   ;;  %s1160_s2 = inlined_call_operand.vmem [shape: bf16[16,32], index: 2, kind: input, shape index: {}]   ;;  %s1161_s3 = inlined_call_operand.vmem [shape: bf16[16,32], index: 3, kind: input, shape index: {}]   ;;  %s1162_s4 = inlined_call_operand.vmem [shape: f32[1,32], index: 4, kind: input, shape index: {}]   ;;  %s1163_s5 = inlined_call_operand.vmem [shape: bf16[256,32], index: 5, kind: output, shape index: {}]  }
   0x1 LB: > { %s1023_s19 = sadd.s32 4294967295, %s985_s18   ;;  %p821_p0 = scmp.ge.s32.totalorder %s985_s18, 1  ;;  %s985_s18 = sphi %s1017_s18, %s15_s18  }
   0x2   : > { %p189_p1 = scmp.lt.s32.totalorder %s985_s18, 5 }
   0x4   : > { %p190_p2 = pnand %p821_p0, %p189_p1 }
   0x5   : > { %s822_s22 = sshll.u32 (!%p190_p2), %s1023_s19, 1  ;;  %s827_s13 = sshll.u32 (!%p190_p2), %s1023_s19, 6 }
   0x6   : > { %193 = sbr.rel (%p190_p2) target bundleno = 496 (0x1f0), region = 40  ;;  %p219_p3 = scmp.lt.s32.totalorder (!%p190_p2), %s822_s22, 7 }
   0x7   : > { %s438_s14 = sshra.s32 (!%p190_p2), %s827_s13, 3  ;;  %s825_s21 = sshll.u32 (!%p190_p2), %s1023_s19, 3 }
   0x8   : > { %s844_s15 = sshll.u32 (!%p190_p2), %s438_s14, 2  ;;  %p226_p4 = scmp.lt.s32.totalorder (!%p190_p2), %s825_s21, 31 }
   0x9   : > { %s1091_s20 = scalar_lea.vmem (!%p190_p2), %s1158_s0, %s844_s15 }
   0xb   : > { %v957_v0 = vld [vmem:[%s1158_s0 + $0x78] sm:$0xff]   ;;  %v959_v2 = vld [vmem:[%s1158_s0 + $0x70] sm:$0xff]   ;;  %v961_v4 = vld [vmem:[%s1158_s0 + $0x68] sm:$0xff]   ;;  %s1165_s22 = smov (!%p219_p3, %s822_s22), 7  ;;  %vm464_vm0 = vcmask 130048   ;;  %s1167_s21 = smov (!%p226_p4, %s825_s21), 31 }
   0xc   : > { %v958_v1 = vld [vmem:[%s1158_s0 + $0x38] sm:$0xff]   ;;  %879 = vmatprep.subr.bf16.mxu0 %v957_v0  ;;  %v960_v3 = vld [vmem:[%s1158_s0 + $0x30] sm:$0xff]   ;;  %v962_v5 = vld [vmem:[%s1158_s0 + $0x28] sm:$0xff]   ;;  %s870_s10 = sshll.u32 %s1165_s22, 4  ;;  %s826_s19 = sshll.u32 %s1167_s21, 2  ;;  %vm750_vm2 = vcmask 257024  }
   0xd   : > { %880 = vmatpush3.bf16.msra.mxu0 %v958_v1  ;;  %v963_v6 = vld [vmem:[%s1158_s0 + $0x60] sm:$0xff]   ;;  %v965_v8 = vld [vmem:[%s1158_s0 + $0x58] sm:$0xff]   ;;  %s223_s17 = scalar_lea.vmem %s1159_s1, %s870_s10  ;;  %v967_v10 = vld [vmem:[%s1158_s0 + $0x50] sm:$0xff]   ;;  %v668_v1 = vlaneseq  ;;  %s1126_s26 = scalar_lea.vmem %s1163_s5, %s826_s19 }
   0xe   : > { %881 = vmatprep.subr.bf16.mxu0 %v959_v2  ;;  %v964_v7 = vld [vmem:[%s1158_s0 + $0x20] sm:$0xff]   ;;  %v966_v9 = vld [vmem:[%s1158_s0 + $0x18] sm:$0xff]   ;;  %v234_v11 = vld [vmem:[%s223_s17 + $0x8] sm:$0xff] }
   0xf   : > { %v238_v12 = vunpack.c.l.s8.bf16 %v234_v11  ;;  %v968_v13 = vld [vmem:[%s1158_s0 + $0x10] sm:$0xff]   ;;  %v969_v14 = vld [vmem:[%s1158_s0 + $0x48] sm:$0xff]   ;;  %v971_v16 = vld [vmem:[%s1158_s0 + $0x40] sm:$0xff]   ;;  %v240_v20 = vunpack.c.h.s8.bf16 %v234_v11 }
  0x10   : > { %v970_v15 = vld [vmem:[%s1158_s0 + $0x8] sm:$0xff]   ;;  %v972_v17 = vld [vmem:[%s1158_s0] sm:$0xff]   ;;  %v236_v21 = vld [vmem:[%s223_s17 + $0x18] sm:$0xff] }
  0x11   : > { %882 = vmatpush3.bf16.msra.mxu0 %v960_v3  ;;  %405 = vmatprep.mubr.bf16.mxu0 %v238_v12  ;;  %v233_v18 = vld [vmem:[%s223_s17] sm:$0xff]  ;;  %v242_v23 = vunpack.c.l.s8.bf16 %v236_v21  ;;  %v235_v24 = vld [vmem:[%s223_s17 + $0x10] sm:$0xff]  ;;  %v244_v26 = vunpack.c.h.s8.bf16 %v236_v21  ;;  %v976_v59 = vld [vmem:[%s1091_s20 + $0x8] sm:$0xff]  }
  0x12   : > { %883 = vmatprep.subr.bf16.mxu0 %v961_v4  ;;  %v237_v19 = vunpack.c.l.s8.bf16 %v233_v18  ;;  %v239_v22 = vunpack.c.h.s8.bf16 %v233_v18  ;;  %v241_v25 = vunpack.c.l.s8.bf16 %v235_v24  ;;  %v243_v27 = vunpack.c.h.s8.bf16 %v235_v24  ;;  %v973_v28 = vld [vmem:[%s1161_s3] sm:$0xff]   ;;  %v977_v60 = vld [vmem:[%s1091_s20 + $0x10] sm:$0xff]   ;;  %v978_v61 = vld [vmem:[%s1091_s20 + $0x18] sm:$0xff]  }
  0x13   : > { %929 = vmatprep.subr.bf16.mxu1 %v973_v28  ;;  %v974_v29 = vld [vmem:[%s1160_s2] sm:$0xff]   ;;  %v669_v4 = vshrl.u32 %v668_v1, 7 }
  0x14   : > { %930 = vmatpush3.bf16.msra.mxu1 %v973_v28  ;;  %v975_v57 = vld [vmem:[%s1091_s20] sm:$0xff]  }
  0x15   : > { %884 = vmatpush3.bf16.msra.mxu0 %v962_v5  ;;  %939 = vmatprep.subr.bf16.mxu1 %v974_v29  ;;  %v1115_v11 = vld [vmem:[%s1162_s4] ss:$0 sm:$0xff]  ;;  %v673_v28 = vadd.s32 32, %v669_v4 }
  0x16   : > { %885 = vmatprep.subr.bf16.mxu0 %v963_v6 }
  0x19   : > { %886 = vmatpush3.bf16.msra.mxu0 %v964_v7  ;;  %v671_v7 = vadd.s32 16, %v669_v4 }
  0x1a   : > { %887 = vmatprep.subr.bf16.mxu0 %v965_v8  ;;  %v1108_v8 = vstv %s827_s13 }
  0x1b   : > { %v680_v12 = vadd.s32 %v1108_v8, %v671_v7 }
  0x1d   : > { %888 = vmatpush3.bf16.msra.mxu0 %v966_v9  ;;  %vm688_vm1 = vcmp.lt.s32.totalorder %v680_v12, 256 }
  0x1e   : > { %889 = vmatprep.subr.bf16.mxu0 %v967_v10 }
  0x21   : > { %890 = vmatpush3.bf16.msra.mxu0 %v968_v13  ;;  %v672_v13 = vadd.s32 24, %v669_v4 }
  0x22   : > { %891 = vmatprep.subr.bf16.mxu0 %v969_v14 }
  0x23   : > { %v681_v21 = vadd.s32 %v1108_v8, %v672_v13 }
  0x25   : > { %892 = vmatpush3.bf16.msra.mxu0 %v970_v15  ;;  %vm689_vm4 = vcmp.lt.s32.totalorder %v681_v21, 256 }
  0x26   : > { %893 = vmatprep.subr.bf16.mxu0 %v971_v16  ;;  %v678_v16 = vadd.s32 %v1108_v8, %v669_v4 }
  0x28   : > { %vm686_vm3 = vcmp.lt.s32.totalorder %v678_v16, 256 }
  0x29   : > { %894 = vmatpush3.bf16.msra.mxu0 %v972_v17  ;;  %v670_v17 = vadd.s32 8, %v669_v4 }
  0x2c   : > { %406 = vmatmul.mubr.bf16.vlgmr.msra.gmra.mxu0 %v237_v19 }
  0x2d   : > { %413 = vmatprep.mubr.bf16.mxu0 %v240_v20 }
  0x34   : > { %414 = vmatmul.mubr.bf16.gmra.mxu0 %v239_v22  ;;  %v675_v22 = vadd.s32 48, %v669_v4 }
  0x35   : > { %421 = vmatprep.mubr.bf16.mxu0 %v242_v23 }
  0x3c   : > { %422 = vmatmul.mubr.bf16.gmra.mxu0 %v241_v25 }
  0x3d   : > { %429 = vmatprep.mubr.bf16.mxu0 %v244_v26 }
  0x44   : > { %430 = vmatmul.mubr.bf16.gmra.mxu0 %v243_v27  ;;  %v679_v27 = vadd.s32 %v1108_v8, %v670_v17 }
  0x46   : > { %vm687_vm5 = vcmp.lt.s32.totalorder %v679_v27, 256 }
  0xec   : > { %v895_v30 = vpop.f32.mrf.mxu0 }
  0xee   : > { %v896_v31 = vpop.f32.mrf.mxu0 }
  0xef   : > { %v897_v34 = vadd.f32 %v896_v31, %v895_v30 }
  0xf0   : > { %v898_v32 = vpop.f32.mrf.mxu0 }
  0xf2   : > { %v899_v33 = vpop.f32.mrf.mxu0 }
  0xf3   : > { %v900_v35 = vadd.f32 %v899_v33, %v898_v32 }
  0xf4   : > { %v901_v36 = vpop.f32.mrf.mxu0 }
  0xf5   : > { %v452_v37 = vpack.c.bf16 %v900_v35, %v897_v34  ;;  %v684_v35 = vadd.s32 %v1108_v8, %v675_v22 }
  0xf6   : > { %v902_v38 = vpop.f32.mrf.mxu0 }
  0xf7   : > { %931 = vmatprep.mubr.msk.bf16.mxu1 %vm464_vm0, %v452_v37  ;;  %v903_v41 = vadd.f32 %v902_v38, %v901_v36  ;;  %v676_v36 = vadd.s32 56, %v669_v4  ;;  %vm692_vm6 = vcmp.lt.s32.totalorder %v684_v35, 256 }
  0xf8   : > { %v904_v39 = vpop.f32.mrf.mxu0 }
  0xfa   : > { %v905_v40 = vpop.f32.mrf.mxu0 }
  0xfb   : > { %v906_v42 = vadd.f32 %v905_v40, %v904_v39 }
  0xfc   : > { %v907_v43 = vpop.f32.mrf.mxu0 }
  0xfd   : > { %v453_v44 = vpack.c.bf16 %v906_v42, %v903_v41 }
  0xfe   : > { %v908_v45 = vpop.f32.mrf.mxu0 }
  0xff   : > { %932 = vmatmul.mubr.msk.bf16.vlgmr.msra.gmra.mxu1 %vm464_vm0, %v453_v44  ;;  %v909_v48 = vadd.f32 %v908_v45, %v907_v43  ;;  %v682_v43 = vadd.s32 %v1108_v8, %v673_v28  ;;  %v674_v44 = vadd.s32 40, %v669_v4 }
 0x100   : > { %v910_v46 = vpop.f32.mrf.mxu0  ;;  %940 = vmatpush3.bf16.msra.mxu1 %v974_v29 }
 0x101   : > { %vm690_vm7 = vcmp.lt.s32.totalorder %v682_v43, 256 }
 0x102   : > { %v911_v47 = vpop.f32.mrf.mxu0 }
 0x103   : > { %v912_v49 = vadd.f32 %v911_v47, %v910_v46 }
 0x104   : > { %v913_v50 = vpop.f32.mrf.mxu0 }
 0x105   : > { %v454_v51 = vpack.c.bf16 %v912_v49, %v909_v48 }
 0x106   : > { %v914_v52 = vpop.f32.mrf.mxu0 }
 0x107   : > { %935 = vmatprep.mubr.msk.bf16.mxu1 %vm464_vm0, %v454_v51  ;;  %v915_v55 = vadd.f32 %v914_v52, %v913_v50  ;;  %v685_v51 = vadd.s32 %v1108_v8, %v676_v36 }
 0x108   : > { %v916_v53 = vpop.f32.mrf.mxu0 }
 0x109   : > { %vm693_vm8 = vcmp.lt.s32.totalorder %v685_v51, 256 }
 0x10a   : > { %v917_v54 = vpop.f32.mrf.mxu0 }
 0x10b   : > { %v918_v56 = vadd.f32 %v917_v54, %v916_v53 }
 0x10d   : > { %v455_v58 = vpack.c.bf16 %v918_v56, %v915_v55 }
 0x10f   : > { %936 = vmatmul.mubr.msk.bf16.gmra.mxu1 %vm464_vm0, %v455_v58  ;;  %v683_v58 = vadd.s32 %v1108_v8, %v674_v44 }
 0x110   : > { %941 = vmatprep.mubr.msk.bf16.mxu1 %vm464_vm0, %v975_v57 }
 0x111   : > { %vm691_vm9 = vcmp.lt.s32.totalorder %v683_v58, 256 }
 0x117   : > { %942 = vmatmul.mubr.msk.bf16.vlgmr.msra.gmra.mxu1 %vm464_vm0, %v976_v59 }
 0x118   : > { %945 = vmatprep.mubr.msk.bf16.mxu1 %vm464_vm0, %v977_v60 }
 0x11f   : > { %946 = vmatmul.mubr.msk.bf16.gmra.mxu1 %vm464_vm0, %v978_v61 }
 0x1bf   : > { %v933_v62 = vpop.f32.mrf.mxu1 }
 0x1c1   : > { %v511_v63 = vpop.f32.mrf.mxu1 }
 0x1c3   : > { %v934_v0 = vpop.f32.mrf.mxu1 }
 0x1c5   : > { %v514_v2 = vpop.f32.mrf.mxu1 }
 0x1cf   : > { %v937_v3 = vpop.f32.mrf.mxu1 }
 0x1d1   : > { %v527_v5 = vpop.f32.mrf.mxu1 }
 0x1d3   : > { %v938_v6 = vpop.f32.mrf.mxu1 }
 0x1d5   : > { %v1110_v9 = vpop.f32.mrf.mxu1 }
 0x1d7   : > { %v943_v10 = vpop.f32.mrf.mxu1 }
 0x1d8   : > { %v623_v14 = vadd.f32 %v943_v10, %v933_v62 }
 0x1d9   : > { %v614_v15 = vpop.f32.mrf.mxu1 }
 0x1da   : > { %v654_v18 = vadd.f32 %v1115_v11, %v623_v14  ;;  %v615_v19 = vadd.f32 %v614_v15, %v511_v63 }
 0x1db   : > { %v944_v20 = vpop.f32.mrf.mxu1 }
 0x1dc   : > { %v662_v23 = vmax.f32 %v654_v18, 0.0  ;;  %v652_v24 = vadd.f32 %v1115_v11, %v615_v19  ;;  %v626_v25 = vadd.f32 %v944_v20, %v934_v0 }
 0x1dd   : > { %v617_v26 = vpop.f32.mrf.mxu1 }
 0x1de   : > { %v712_v29 = vsel %vm688_vm1, %v662_v23, 0.0  ;;  %v660_v30 = vmax.f32 %v652_v24, 0.0  ;;  %v655_v31 = vadd.f32 %v1115_v11, %v626_v25  ;;  %v618_v32 = vadd.f32 %v617_v26, %v514_v2 }
 0x1df   : > { %v873_v33 = vpack.c.bf16 %v712_v29, %v712_v29  ;;  %v947_v34 = vpop.f32.mrf.mxu1 }
 0x1e0   : > { %v710_v37 = vsel %vm686_vm3, %v660_v30, 0.0  ;;  %v663_v38 = vmax.f32 %v655_v31, 0.0  ;;  %v653_v39 = vadd.f32 %v1115_v11, %v618_v32  ;;  %v639_v40 = vadd.f32 %v947_v34, %v937_v3 }
 0x1e1   : > { %753 = vst.msk [vmem:[%s1126_s26 + $0x8] sm:$0xf] %vm750_vm2, %v873_v33  ;;  %v871_v41 = vpack.c.bf16 %v710_v37, %v710_v37  ;;  %v630_v42 = vpop.f32.mrf.mxu1 }
 0x1e2   : > { %v713_v45 = vsel %vm689_vm4, %v663_v38, 0.0  ;;  %v661_v46 = vmax.f32 %v653_v39, 0.0  ;;  %v658_v47 = vadd.f32 %v1115_v11, %v639_v40  ;;  %v631_v48 = vadd.f32 %v630_v42, %v527_v5 }
 0x1e3   : > { %751 = vst.msk [vmem:[%s1126_s26] sm:$0xf] %vm750_vm2, %v871_v41  ;;  %v874_v49 = vpack.c.bf16 %v713_v45, %v713_v45  ;;  %v948_v50 = vpop.f32.mrf.mxu1 }
 0x1e4   : > { %v711_v52 = vsel %vm687_vm5, %v661_v46, 0.0  ;;  %v666_v53 = vmax.f32 %v658_v47, 0.0  ;;  %v656_v54 = vadd.f32 %v1115_v11, %v631_v48  ;;  %v642_v55 = vadd.f32 %v948_v50, %v938_v6 }
 0x1e5   : > { %754 = vst.msk [vmem:[%s1126_s26 + $0xc] sm:$0xf] %vm750_vm2, %v874_v49  ;;  %v872_v56 = vpack.c.bf16 %v711_v52, %v711_v52  ;;  %v633_v57 = vpop.f32.mrf.mxu1 }
 0x1e6   : > { %v716_v59 = vsel %vm692_vm6, %v666_v53, 0.0  ;;  %v664_v60 = vmax.f32 %v656_v54, 0.0  ;;  %v659_v61 = vadd.f32 %v1115_v11, %v642_v55  ;;  %v634_v62 = vadd.f32 %v633_v57, %v1110_v9 }
 0x1e7   : > { %752 = vst.msk [vmem:[%s1126_s26 + $0x4] sm:$0xf] %vm750_vm2, %v872_v56  ;;  %v877_v63 = vpack.c.bf16 %v716_v59, %v716_v59 }
 0x1e8   : > { %v714_v0 = vsel %vm690_vm7, %v664_v60, 0.0  ;;  %v667_v1 = vmax.f32 %v659_v61, 0.0  ;;  %v657_v2 = vadd.f32 %v1115_v11, %v634_v62 }
 0x1e9   : > { %757 = vst.msk [vmem:[%s1126_s26 + $0x18] sm:$0xf] %vm750_vm2, %v877_v63  ;;  %v875_v3 = vpack.c.bf16 %v714_v0, %v714_v0 }
 0x1ea   : > { %v717_v4 = vsel %vm693_vm8, %v667_v1, 0.0  ;;  %v665_v5 = vmax.f32 %v657_v2, 0.0 }
 0x1eb   : > { %755 = vst.msk [vmem:[%s1126_s26 + $0x10] sm:$0xf] %vm750_vm2, %v875_v3  ;;  %v878_v6 = vpack.c.bf16 %v717_v4, %v717_v4 }
 0x1ec   : > { %v715_v7 = vsel %vm691_vm9, %v665_v5, 0.0 }
 0x1ed   : > { %758 = vst.msk [vmem:[%s1126_s26 + $0x1c] sm:$0xf] %vm750_vm2, %v878_v6  ;;  %v876_v8 = vpack.c.bf16 %v715_v7, %v715_v7 }
 0x1ef   : > { %756 = vst.msk [vmem:[%s1126_s26 + $0x14] sm:$0xf] %vm750_vm2, %v876_v8 }
 0x1f0 PF: > { %s15_s18 = sadd.s32 1, %s985_s18  }
 0x1f1   : > { %p12_p5 = scmp.ge.s32.totalorder %s15_s18, 6  }
 0x1f3   :  { %14 = sbr.rel (!%p12_p5) target bundleno = 1 (0x1), region = 71 }

</bundles_post_ra>
